<compile_context>
chip_gen: v7x
topology: tpu7x:2x2x1
jax: 0.10.0
libtpu: 0.0.40
codegen_flags: <defaults>
</compile_context>

<pallas_src>
import functools

import jax
import jax.numpy as jnp
from jax.experimental import pallas as pl
from jax.experimental.pallas import tpu as pltpu

LAM = 0.05  # self.lam (folded into fc1's word-block weights / entity bias)


# ---------------------------------------------------------------------------
# Pallas kernel (per grid step = one batch's seq tile):
#   A   = sigmoid(Xw @ W1_word/lam + ent_bias[b])        (ent_bias has b1 + entity terms)
#   Xe  = [Xw | e1[b] | e2[b]]                            (rebuilt in-register, stored bf16)
#   out = A * Xe + (1 - A) * tanh(Xp @ W2 + b2)           (stored bf16)
# Xw is just the first D lanes of the streamed Xp tile, so Xe never streams from HBM.
# ---------------------------------------------------------------------------
def _fused_gate_kernel(xp_ref, e1_ref, e2_ref, entb_ref, w1w_ref, w2_ref, b2_ref,
                       x_ref, xe_ref, *, d):
    xp = xp_ref[0]                                   # (tm, D+2P) bf16 (streamed)
    xw = xp[:, :d]                                   # (tm, D)    bf16 (word lanes)
    tm = xp.shape[0]

    # fc1 word part (1/lam folded into w1w); per-batch entity part + b1 precomputed.
    z1 = jnp.dot(xw, w1w_ref[...], preferred_element_type=jnp.float32) + entb_ref[0]
    a = jax.nn.sigmoid(z1)                           # (tm, 3D) f32 (EUP)

    z2 = jnp.dot(xp, w2_ref[...], preferred_element_type=jnp.float32) + b2_ref[...]
    t2 = jnp.tanh(z2)                                # (tm, 3D) f32

    # Rebuild Xe from the streamed word lanes + the resident per-batch entity rows.
    e1b = jnp.broadcast_to(e1_ref[0], (tm, d))       # (tm, D) bf16
    e2b = jnp.broadcast_to(e2_ref[0], (tm, d))       # (tm, D) bf16
    xe = jnp.concatenate([xw, e1b, e2b], axis=-1)    # (tm, 3D) bf16
    xe_ref[0] = xe

    x_ref[0] = (a * xe.astype(jnp.float32) + (1.0 - a) * t2).astype(x_ref.dtype)


def prepare_gate_params(params, lam=LAM):
    """One-time transform: split fc1 into word/entity blocks, fold 1/lam, cast MXU
    operands to bf16.  Biases and the (tiny) entity block stay f32."""
    w1 = params["w1"]                                # (3D, 3D) f32, stored (in, out)
    d3 = w1.shape[1]
    d = d3 // 3
    inv = 1.0 / lam
    return {
        "w1_w":   (w1[:d] * inv).astype(jnp.bfloat16),   # (D, 3D)  -> kernel (MXU)
        "w1_ent": w1[d:] * inv,                          # (2D, 3D) -> per-batch precompute
        "b1":     params["b1"],                          # (1, 3D) f32
        "w2":     params["w2"].astype(jnp.bfloat16),     # (D+2P, 3D)
        "b2":     params["b2"],                          # (1, 3D) f32
    }


def fused_gate(xp, e1, e2, ent_bias, gate, *, row_tile=512):
    """xp: (B,S,D+2P) bf16, e1/e2: (B,1,D) bf16, ent_bias: (B,1,3D) f32.
    Returns (X, Xe), each (B,S,3D) bf16."""
    B, S, din2 = xp.shape
    d = gate["w1_w"].shape[0]
    d3 = gate["w1_w"].shape[1]
    # Seq tiles can't cross batch rows (entity rows are per-batch residents); take
    # the whole sequence per step when it fits, else a multiple-of-8 tile (Pallas
    # masks the trailing partial block's stores).
    tm = S if S <= row_tile else row_tile

    cost = pl.CostEstimate(
        flops=2 * B * S * d3 * (d + din2),
        transcendentals=2 * B * S * d3,                  # sigmoid + tanh
        bytes_accessed=xp.size * 2 + 2 * B * S * d3 * 2
        + (gate["w1_w"].size + gate["w2"].size) * 2
        + (ent_bias.size + gate["b2"].size) * 4,
    )
    x_out, xe_out = pl.pallas_call(
        functools.partial(_fused_gate_kernel, d=d),
        grid=(B, pl.cdiv(S, tm)),
        in_specs=[
            pl.BlockSpec((1, tm, din2), lambda b, t: (b, t, 0)),   # Xp tile (streamed)
            pl.BlockSpec((1, 1, d),  lambda b, t: (b, 0, 0)),      # e1 row   (per-batch)
            pl.BlockSpec((1, 1, d),  lambda b, t: (b, 0, 0)),      # e2 row   (per-batch)
            pl.BlockSpec((1, 1, d3), lambda b, t: (b, 0, 0)),      # fc1 entity bias
            pl.BlockSpec((d, d3),    lambda b, t: (0, 0)),         # W1_word (resident)
            pl.BlockSpec((din2, d3), lambda b, t: (0, 0)),         # W2      (resident)
            pl.BlockSpec((1, d3),    lambda b, t: (0, 0)),         # b2      (resident)
        ],
        out_specs=(
            pl.BlockSpec((1, tm, d3), lambda b, t: (b, t, 0)),     # X
            pl.BlockSpec((1, tm, d3), lambda b, t: (b, t, 0)),     # Xe
        ),
        out_shape=(
            jax.ShapeDtypeStruct((B, S, d3), jnp.bfloat16),
            jax.ShapeDtypeStruct((B, S, d3), jnp.bfloat16),
        ),
        compiler_params=pltpu.CompilerParams(
            dimension_semantics=("parallel", "parallel"),          # v7x: grid >= B steps
        ),
        cost_estimate=cost,
    )(xp, e1, e2, ent_bias, gate["w1_w"], gate["w2"], gate["b2"])
    return x_out, xe_out


# ---------------------------------------------------------------------------
# Plain-JAX glue: embedding gathers + Xp concat + tiny per-batch fc1 entity term.
# ---------------------------------------------------------------------------
def entity_aware_embedding(params, gate, X, X_Pos1, X_Pos2, X_Ent1, X_Ent2):
    we = params["word_emb"]                                # (V, D) bf16
    Xw = jnp.take(we, X, axis=0)                           # (B, S, D)
    Xp1 = jnp.take(params["pos1_emb"], X_Pos1, axis=0)     # (B, S, P)
    Xp2 = jnp.take(params["pos2_emb"], X_Pos2, axis=0)     # (B, S, P)
    Xp = jnp.concatenate([Xw, Xp1, Xp2], axis=-1)          # (B, S, D+2P) bf16

    e1 = jnp.take(we, X_Ent1, axis=0)                      # (B, D) bf16
    e2 = jnp.take(we, X_Ent2, axis=0)                      # (B, D) bf16

    # Per-batch fc1 entity contribution: ([e1|e2]/lam) @ W1[D:, :] + b1  (tiny, f32).
    ent = jnp.concatenate([e1, e2], axis=-1).astype(jnp.float32)       # (B, 2D)
    ent_bias = ent @ gate["w1_ent"] + gate["b1"]                       # (B, 3D) f32

    B, S, d = Xw.shape
    x_out, xe_out = fused_gate(
        Xp, e1.reshape(B, 1, d), e2.reshape(B, 1, d),
        ent_bias.reshape(B, 1, -1), gate)
    return Xp, xe_out, x_out


# ---------------------------------------------------------------------------
# Deterministic parameter init (xavier-uniform-style, synthetic pretrained table)
# ---------------------------------------------------------------------------
def _xavier(key, shape):
    fan_in, fan_out = shape[0], shape[1]
    bound = (6.0 / (fan_in + fan_out)) ** 0.5
    return jax.random.uniform(key, shape, jnp.float32, -bound, bound)


def init_params(key, vocab, word_dim, pos_dim=5, pos_len=100):
    k = jax.random.split(key, 5)
    d3 = 3 * word_dim
    din2 = 2 * pos_dim + word_dim
    return {
        # Embedding tables kept bf16 so gathers/concats feed the kernel directly
        # (no extra HBM pad/cast copies of the activations).
        "word_emb": (jax.random.normal(k[0], (vocab, word_dim), jnp.float32) * 0.1
                     ).astype(jnp.bfloat16),
        "pos1_emb": _xavier(k[1], (2 * pos_len + 1, pos_dim)).astype(jnp.bfloat16),
        "pos2_emb": _xavier(k[2], (2 * pos_len + 1, pos_dim)).astype(jnp.bfloat16),
        "w1": _xavier(k[3], (d3, d3)),           # fc1: 3D -> 3D (stored (in, out)), f32 master
        "b1": jnp.zeros((1, d3), jnp.float32),
        "w2": _xavier(k[4], (din2, d3)),         # fc2: (2P+D) -> 3D, f32 master
        "b2": jnp.zeros((1, d3), jnp.float32),
    }


# Pure-JAX f32 reference for a correctness check of the kernel path.
def _ref_gate(xp2d, xe2d, p):
    a = jax.nn.sigmoid((xe2d / LAM) @ p["w1"] + p["b1"])
    return a * xe2d + (1 - a) * jnp.tanh(xp2d @ p["w2"] + p["b2"])


if __name__ == "__main__":
    B, S, D, P, POS_LEN, V = 2, 256, 32, 5, 100, 50
    key = jax.random.PRNGKey(0)
    kp, kx, kp1, kp2, ke1, ke2 = jax.random.split(key, 6)

    params = init_params(kp, V, D, P, POS_LEN)
    gate = prepare_gate_params(params)   # one-time: split fc1, fold 1/lam, cast bf16

    X = jax.random.randint(kx, (B, S), 0, V)
    X_Pos1 = jax.random.randint(kp1, (B, S), 0, 2 * POS_LEN + 1)
    X_Pos2 = jax.random.randint(kp2, (B, S), 0, 2 * POS_LEN + 1)
    X_Ent1 = jax.random.randint(ke1, (B,), 0, V)
    X_Ent2 = jax.random.randint(ke2, (B,), 0, V)

    fwd = jax.jit(entity_aware_embedding)
    Xp, Xe, Xout = fwd(params, gate, X, X_Pos1, X_Pos2, X_Ent1, X_Ent2)
    jax.block_until_ready((Xp, Xe, Xout))

    assert Xp.shape == (B, S, D + 2 * P)
    assert Xe.shape == (B, S, 3 * D)
    assert Xout.shape == (B, S, 3 * D)

    # Xe must be an exact (bf16) copy of [Xw | e1 | e2].
    e1_ref = jnp.broadcast_to(jnp.take(params["word_emb"], X_Ent1, axis=0)[:, None, :],
                              (B, S, D))
    e2_ref = jnp.broadcast_to(jnp.take(params["word_emb"], X_Ent2, axis=0)[:, None, :],
                              (B, S, D))
    Xe_ref = jnp.concatenate([Xp[..., :D], e1_ref, e2_ref], axis=-1)
    assert bool(jnp.array_equal(Xe, Xe_ref))

    # Gated output vs pure-f32 reference (bf16 matmul operands + bf16 output -> relaxed tol).
    ref = _ref_gate(Xp.astype(jnp.float32).reshape(B * S, -1),
                    Xe.astype(jnp.float32).reshape(B * S, -1), params)
    assert jnp.allclose(Xout.astype(jnp.float32).reshape(B * S, -1), ref,
                        atol=3e-2, rtol=3e-2)

    print("KERNEL_OK")
</pallas_src>

<mosaic_0001>
module attributes {stable_mosaic.version = 11 : i64} {
  func.func @_fused_gate_kernel(%arg0: i32, %arg1: i32, %arg2: memref<1x256x42xbf16, #tpu.memory_space<vmem>>, %arg3: memref<1x1x32xbf16, #tpu.memory_space<vmem>>, %arg4: memref<1x1x32xbf16, #tpu.memory_space<vmem>>, %arg5: memref<1x1x96xf32, #tpu.memory_space<vmem>>, %arg6: memref<32x96xbf16, #tpu.memory_space<vmem>>, %arg7: memref<42x96xbf16, #tpu.memory_space<vmem>>, %arg8: memref<1x96xf32, #tpu.memory_space<vmem>>, %arg9: memref<1x256x96xbf16, #tpu.memory_space<vmem>>, %arg10: memref<1x256x96xbf16, #tpu.memory_space<vmem>>) attributes {dimension_semantics = [#tpu.dimension_semantics<parallel>, #tpu.dimension_semantics<parallel>], iteration_bounds = array<i64: 2, 1>, scalar_prefetch = 0 : i64, scratch_operands = 0 : i64, tpu.core_type = #tpu.core_type<tc>, window_params = [{transform_indices = @transform_0, window_bounds = array<i64: 1, 256, 42>}, {transform_indices = @transform_1, window_bounds = array<i64: 1, 1, 32>}, {transform_indices = @transform_2, window_bounds = array<i64: 1, 1, 32>}, {transform_indices = @transform_3, window_bounds = array<i64: 1, 1, 96>}, {pipeline_mode = #tpu.pipeline_mode<synchronous>, transform_indices = @transform_4, window_bounds = array<i64: 32, 96>}, {pipeline_mode = #tpu.pipeline_mode<synchronous>, transform_indices = @transform_5, window_bounds = array<i64: 42, 96>}, {pipeline_mode = #tpu.pipeline_mode<synchronous>, transform_indices = @transform_6, window_bounds = array<i64: 1, 96>}, {transform_indices = @transform_7, window_bounds = array<i64: 1, 256, 96>}, {transform_indices = @transform_8, window_bounds = array<i64: 1, 256, 96>}]} {
    %c0 = arith.constant 0 : index
    %c0_0 = arith.constant 0 : index
    %c0_1 = arith.constant 0 : index
    %0 = vector.load %arg2[%c0, %c0_0, %c0_1] : memref<1x256x42xbf16, #tpu.memory_space<vmem>>, vector<1x256x42xbf16>
    %1 = vector.shape_cast %0 : vector<1x256x42xbf16> to vector<256x42xbf16>
    %2 = vector.extract_strided_slice %1 {offsets = [0, 0], sizes = [256, 32], strides = [1, 1]} : vector<256x42xbf16> to vector<256x32xbf16>
    %c0_2 = arith.constant 0 : index
    %c0_3 = arith.constant 0 : index
    %3 = vector.load %arg6[%c0_2, %c0_3] : memref<32x96xbf16, #tpu.memory_space<vmem>>, vector<32x96xbf16>
    %cst = arith.constant dense<0.000000e+00> : vector<256x96xf32>
    %4 = tpu.matmul %2, %3, %cst {dimension_numbers = #tpu.dot_dimension_numbers<[1], [0], [0], [1], [0, 0, 1, 1], [], []>} : vector<256x32xbf16>, vector<32x96xbf16>, vector<256x96xf32> -> vector<256x96xf32>
    %c0_4 = arith.constant 0 : index
    %c0_5 = arith.constant 0 : index
    %c0_6 = arith.constant 0 : index
    %5 = vector.load %arg5[%c0_4, %c0_5, %c0_6] : memref<1x1x96xf32, #tpu.memory_space<vmem>>, vector<1x1x96xf32>
    %6 = vector.shape_cast %5 : vector<1x1x96xf32> to vector<1x96xf32>
    %7 = vector.broadcast %6 : vector<1x96xf32> to vector<256x96xf32>
    %8 = arith.addf %4, %7 : vector<256x96xf32>
    %9 = arith.negf %8 : vector<256x96xf32>
    %10 = math.exp %9 : vector<256x96xf32>
    %cst_7 = arith.constant 1.000000e+00 : f32
    %11 = vector.broadcast %cst_7 : f32 to vector<256x96xf32>
    %12 = arith.addf %11, %10 : vector<256x96xf32>
    %13 = arith.divf %11, %12 : vector<256x96xf32>
    %c0_8 = arith.constant 0 : index
    %c0_9 = arith.constant 0 : index
    %14 = vector.load %arg7[%c0_8, %c0_9] : memref<42x96xbf16, #tpu.memory_space<vmem>>, vector<42x96xbf16>
    %cst_10 = arith.constant dense<0.000000e+00> : vector<256x96xf32>
    %15 = tpu.matmul %1, %14, %cst_10 {dimension_numbers = #tpu.dot_dimension_numbers<[1], [0], [0], [1], [0, 0, 1, 1], [], []>} : vector<256x42xbf16>, vector<42x96xbf16>, vector<256x96xf32> -> vector<256x96xf32>
    %c0_11 = arith.constant 0 : index
    %c0_12 = arith.constant 0 : index
    %16 = vector.load %arg8[%c0_11, %c0_12] : memref<1x96xf32, #tpu.memory_space<vmem>>, vector<1x96xf32>
    %17 = vector.broadcast %16 : vector<1x96xf32> to vector<256x96xf32>
    %18 = arith.addf %15, %17 : vector<256x96xf32>
    %19 = math.tanh %18 : vector<256x96xf32>
    %c0_13 = arith.constant 0 : index
    %c0_14 = arith.constant 0 : index
    %c0_15 = arith.constant 0 : index
    %20 = vector.load %arg3[%c0_13, %c0_14, %c0_15] : memref<1x1x32xbf16, #tpu.memory_space<vmem>>, vector<1x1x32xbf16>
    %21 = vector.shape_cast %20 : vector<1x1x32xbf16> to vector<1x32xbf16>
    %22 = vector.shape_cast %21 : vector<1x32xbf16> to vector<1x32xbf16>
    %23 = vector.broadcast %22 : vector<1x32xbf16> to vector<256x32xbf16>
    %c0_16 = arith.constant 0 : index
    %c0_17 = arith.constant 0 : index
    %c0_18 = arith.constant 0 : index
    %24 = vector.load %arg4[%c0_16, %c0_17, %c0_18] : memref<1x1x32xbf16, #tpu.memory_space<vmem>>, vector<1x1x32xbf16>
    %25 = vector.shape_cast %24 : vector<1x1x32xbf16> to vector<1x32xbf16>
    %26 = vector.shape_cast %25 : vector<1x32xbf16> to vector<1x32xbf16>
    %27 = vector.broadcast %26 : vector<1x32xbf16> to vector<256x32xbf16>
    %28 = tpu.concatenate %2, %23, %27 in 1 : vector<256x32xbf16>, vector<256x32xbf16>, vector<256x32xbf16> -> vector<256x96xbf16>
    %c0_19 = arith.constant 0 : index
    %c0_20 = arith.constant 0 : index
    %c0_21 = arith.constant 0 : index
    %29 = vector.load %arg10[%c0_19, %c0_20, %c0_21] : memref<1x256x96xbf16, #tpu.memory_space<vmem>>, vector<1x256x96xbf16>
    %30 = vector.shape_cast %29 : vector<1x256x96xbf16> to vector<256x96xbf16>
    %31 = vector.shape_cast %28 : vector<256x96xbf16> to vector<1x256x96xbf16>
    tpu.vector_store %arg10[%c0_19, %c0_20, %c0_21], %31 {strides = array<i32>} : memref<1x256x96xbf16, #tpu.memory_space<vmem>>, vector<1x256x96xbf16>,
    %32 = arith.extf %28 : vector<256x96xbf16> to vector<256x96xf32>
    %33 = arith.mulf %13, %32 : vector<256x96xf32>
    %cst_22 = arith.constant 1.000000e+00 : f32
    %34 = vector.broadcast %cst_22 : f32 to vector<256x96xf32>
    %35 = arith.subf %34, %13 : vector<256x96xf32>
    %36 = arith.mulf %35, %19 : vector<256x96xf32>
    %37 = arith.addf %33, %36 : vector<256x96xf32>
    %38 = arith.truncf %37 : vector<256x96xf32> to vector<256x96xbf16>
    %c0_23 = arith.constant 0 : index
    %c0_24 = arith.constant 0 : index
    %c0_25 = arith.constant 0 : index
    %39 = vector.load %arg9[%c0_23, %c0_24, %c0_25] : memref<1x256x96xbf16, #tpu.memory_space<vmem>>, vector<1x256x96xbf16>
    %40 = vector.shape_cast %39 : vector<1x256x96xbf16> to vector<256x96xbf16>
    %41 = vector.shape_cast %38 : vector<256x96xbf16> to vector<1x256x96xbf16>
    tpu.vector_store %arg9[%c0_23, %c0_24, %c0_25], %41 {strides = array<i32>} : memref<1x256x96xbf16, #tpu.memory_space<vmem>>, vector<1x256x96xbf16>,
    return
  }
  func.func @transform_0(%arg0: i32, %arg1: i32) -> (i32, i32, i32) {
    %c0_i32 = arith.constant 0 : i32
    %c0_i32_0 = arith.constant 0 : i32
    return %arg0, %arg1, %c0_i32 : i32, i32, i32
  }
  func.func @transform_1(%arg0: i32, %arg1: i32) -> (i32, i32, i32) {
    %c0_i32 = arith.constant 0 : i32
    %c0_i32_0 = arith.constant 0 : i32
    %c0_i32_1 = arith.constant 0 : i32
    return %arg0, %c0_i32, %c0_i32_0 : i32, i32, i32
  }
  func.func @transform_2(%arg0: i32, %arg1: i32) -> (i32, i32, i32) {
    %c0_i32 = arith.constant 0 : i32
    %c0_i32_0 = arith.constant 0 : i32
    %c0_i32_1 = arith.constant 0 : i32
    return %arg0, %c0_i32, %c0_i32_0 : i32, i32, i32
  }
  func.func @transform_3(%arg0: i32, %arg1: i32) -> (i32, i32, i32) {
    %c0_i32 = arith.constant 0 : i32
    %c0_i32_0 = arith.constant 0 : i32
    %c0_i32_1 = arith.constant 0 : i32
    return %arg0, %c0_i32, %c0_i32_0 : i32, i32, i32
  }
  func.func @transform_4(%arg0: i32, %arg1: i32) -> (i32, i32) {
    %c0_i32 = arith.constant 0 : i32
    %c0_i32_0 = arith.constant 0 : i32
    %c0_i32_1 = arith.constant 0 : i32
    return %c0_i32, %c0_i32_0 : i32, i32
  }
  func.func @transform_5(%arg0: i32, %arg1: i32) -> (i32, i32) {
    %c0_i32 = arith.constant 0 : i32
    %c0_i32_0 = arith.constant 0 : i32
    %c0_i32_1 = arith.constant 0 : i32
    return %c0_i32, %c0_i32_0 : i32, i32
  }
  func.func @transform_6(%arg0: i32, %arg1: i32) -> (i32, i32) {
    %c0_i32 = arith.constant 0 : i32
    %c0_i32_0 = arith.constant 0 : i32
    %c0_i32_1 = arith.constant 0 : i32
    return %c0_i32, %c0_i32_0 : i32, i32
  }
  func.func @transform_7(%arg0: i32, %arg1: i32) -> (i32, i32, i32) {
    %c0_i32 = arith.constant 0 : i32
    %c0_i32_0 = arith.constant 0 : i32
    return %arg0, %arg1, %c0_i32 : i32, i32, i32
  }
  func.func @transform_8(%arg0: i32, %arg1: i32) -> (i32, i32, i32) {
    %c0_i32 = arith.constant 0 : i32
    %c0_i32_0 = arith.constant 0 : i32
    return %arg0, %arg1, %c0_i32 : i32, i32, i32
  }
}

</mosaic_0001>

<bundles_post_ra>
// kernel: entity_aware_embedding.1
= control target key start
LH: loop header
LB: loop body
LE: loop exit
PB: predicated region body
PF: predicated region fallthrough
CT: control target
= control target key end

     0   :  { %s2533_s27 = smov 0   ;;  %s2535_s28 = smov 0   ;;  %s3321_s0 = inlined_call_operand.vmem [shape: bf16[2,256,42], index: 0, kind: input, shape index: {}]   ;;  %s3322_s1 = inlined_call_operand.vmem [shape: bf16[2,1,32], index: 1, kind: input, shape index: {}]   ;;  %s3323_s2 = inlined_call_operand.vmem [shape: bf16[2,1,32], index: 2, kind: input, shape index: {}]   ;;  %s3324_s3 = inlined_call_operand.vmem [shape: f32[2,1,96], index: 3, kind: input, shape index: {}]   ;;  %s3325_s4 = inlined_call_operand.vmem [shape: bf16[32,96], index: 4, kind: input, shape index: {}]   ;;  %s3326_s5 = inlined_call_operand.vmem [shape: bf16[42,96], index: 5, kind: input, shape index: {}]   ;;  %s3327_s6 = inlined_call_operand.vmem [shape: f32[1,96], index: 6, kind: input, shape index: {}]   ;;  %s3328_s7 = inlined_call_operand.vmem [shape: bf16[2,256,96], index: 7, kind: output, shape index: {0}]   ;;  %s3329_s8 = inlined_call_operand.vmem [shape: bf16[2,256,96], index: 8, kind: output, shape index: {1}]  }
   0x1   :  { %s2537_s29 = smov 0  }
   0x2 LB: > { %s31_s30 = sadd.s32 1, %s2480_s28  ;;  %p1915_p0 = scmp.ge.s32.totalorder %s2484_s29, 1  ;;  %s2484_s29 = sphi %s2537_s29, %s19_s29   ;;  %s2480_s28 = sphi %s2535_s28, %s3337_s28   ;;  %s2476_s27 = sphi %s2533_s27, %s3336_s27  }
   0x3   : > { %p33_p1 = scmp.ge.s32.totalorder %s31_s30, 2  ;;  %p312_p2 = scmp.lt.s32.totalorder %s2484_s29, 3 }
   0x5   : > { %s3339_s30 = smov (%p33_p1, %s31_s30), 0  ;;  %p313_p3 = pnand %p1915_p0, %p312_p2 }
   0x6   : > { %v2248_v0 = vld [vmem:[%s3325_s4] sm:$0xff] (!%p313_p3)   ;;  %p373_p4 = scmp.lt.s32.totalorder (!%p313_p3), %s2476_s27, 1  ;;  %v2249_v1 = vld [vmem:[%s3325_s4 + $0x8] sm:$0xff] (!%p313_p3)   ;;  %v1213_v2 = vlaneseq (!%p313_p3)  ;;  %vm547_vm0 = vcmask (!%p313_p3), 261120   ;;  %v2256_v5 = vld [vmem:[%s3326_s5 + $0x10] sm:$0x1f] (!%p313_p3)  }
   0x7   : > { %316 = sbr.rel (%p313_p3) target bundleno = 353 (0x161), region = 48  ;;  %2147 = vmatprep.subr.bf16.mxu0 (!%p313_p3), %v2248_v0  ;;  %v2252_v3 = vld [vmem:[%s3326_s5] sm:$0xff] (!%p313_p3)   ;;  %v2253_v4 = vld [vmem:[%s3326_s5 + $0x8] sm:$0xff] (!%p313_p3)   ;;  %vm979_vm1 = vcmask (!%p313_p3), 343040   ;;  %vm1012_vm2 = vcmask (!%p313_p3), 1044480   ;;  %s2486_s26 = smov (!%p313_p3), 32  }
   0x8   : > { %2148 = vmatpush3.bf16.msra.mxu0 (!%p313_p3), %v2248_v0  ;;  %2183 = vmatprep.subr.bf16.mxu1 (!%p313_p3), %v2252_v3  ;;  %v1214_v7 = vshrl.u32 (!%p313_p3), %v1213_v2, 7  ;;  %v1014_v13 = vsel (!%p313_p3), %vm1012_vm2, %v2256_v5, 0  ;;  %s2487_s12 = smov (!%p313_p3), 64   ;;  %vm1248_vm3 = vcmask (!%p313_p3), 523264   ;;  %vm1394_vm4 = vcmask (!%p313_p3), 781312  }
   0x9   : > { %2149 = vmatprep.subr.bf16.mxu0 (!%p313_p3), %v2249_v1  ;;  %2184 = vmatpush3.bf16.msra.mxu1 (!%p313_p3), %v2252_v3 }
   0xa   : > { %2185 = vmatprep.subr.bf16.mxu1 (!%p313_p3), %v2253_v4  ;;  %v1215_v12 = vsub.s32 (!%p313_p3), 0, %v1214_v7 }
   0xc   : > { %2150 = vmatpush3.bf16.msra.mxu0 (!%p313_p3), %v2249_v1 }
   0xd   : > { %2186 = vmatpush3.bf16.msra.mxu1 (!%p313_p3), %v2253_v4 }
   0xe   : > { %s3341_s27 = smov (!%p373_p4, %s2476_s27), 1  ;;  %2221 = vmatprep.subr.msk.bf16.mxu1 %vm1012_vm2, %v2256_v5 }
   0xf   : > { %s2566_s17 = sshll.u32 %s3341_s27, 7  ;;  %s384_s20 = scalar_lea.vmem %s3322_s1, %s3341_s27 }
  0x10   : > { %s2576_s23 = scalar_lea.vmem %s3321_s0, %s2566_s17  ;;  %v1209_v6 = vld [vmem:[%s384_s20] sm:$0x1]  ;;  %s387_s11 = scalar_lea.vmem %s3323_s2, %s3341_s27 }
  0x11   : > { %v2582_v8 = vld [vmem:[%s2576_s23] sm:$0xff]   ;;  %v1211_v9 = vpack.i.b16 %v1209_v6, %v1209_v6  ;;  %v2585_v10 = vld [vmem:[%s2576_s23 + $0x8] sm:$0xff]   ;;  %v2590_v11 = vld [vmem:[%s2576_s23 + $0x10] sm:$0xff]   ;;  %2188 = vmatpush3.bf16.msra.mxu1 %v1014_v13  ;;  %s2705_s15 = scalar_lea.vmem %s3329_s8, %s2566_s17  ;;  %s390_s19 = scalar_lea.vmem %s3324_s3, %s3341_s27 }
  0x12   : > { %2151 = vmatprep.mubr.msk.bf16.mxu0 %vm547_vm0, %v2582_v8  ;;  %2189 = vmatprep.mubr.msk.bf16.mxu1 %vm979_vm1, %v2582_v8  ;;  %v2255_v15 = vld [vmem:[%s2576_s23 + $0x18] sm:$0xff]   ;;  %v2600_v16 = vld [vmem:[%s2576_s23 + $0x20] sm:$0xff]   ;;  %v2614_v17 = vld [vmem:[%s2576_s23 + $0x28] sm:$0xff]  }
  0x13   : > { %2152 = vmatmul.mubr.msk.bf16.vlgmr.msra.gmra.mrb[0].mxu0 %vm547_vm0, %v2585_v10  ;;  %v1216_v14 = vrot.slane %v1211_v9, %v1215_v12  ;;  %v1217_v18 = vld [vmem:[%s387_s11] sm:$0x1]  ;;  %v2259_v19 = vld [vmem:[%s2576_s23 + $0x30] sm:$0xff]   ;;  %v2624_v22 = vld [vmem:[%s2576_s23 + $0x38] sm:$0xff]  }
  0x14   : > { %2155 = vmatprep.mubr.msk.bf16.mxu0 %vm547_vm0, %v2590_v11  ;;  %2190 = vmatmul.mubr.msk.bf16.vlgmr.msra.gmra.mrb[0].mxu1 %vm979_vm1, %v2585_v10  ;;  %v1219_v20 = vpack.i.b16 %v1217_v18, %v1217_v18  ;;  %v2627_v23 = vld [vmem:[%s2576_s23 + $0x40] sm:$0xff]   ;;  %v2637_v24 = vld [vmem:[%s2576_s23 + $0x48] sm:$0xff]   ;;  %v2640_v25 = vld [vmem:[%s2576_s23 + $0x50] sm:$0xff]  }
  0x15   : > { %1226 = vrot.lane.b32.xlu0 %v1216_v14, %s2486_s26  ;;  %2193 = vmatprep.mubr.msk.bf16.mxu1 %vm979_vm1, %v2590_v11  ;;  %v2651_v26 = vld [vmem:[%s2576_s23 + $0x58] sm:$0xff]   ;;  %v2654_v27 = vld [vmem:[%s2576_s23 + $0x60] sm:$0xff]   ;;  %v2665_v28 = vld [vmem:[%s2576_s23 + $0x68] sm:$0xff]  }
  0x16   : > { %v1224_v21 = vrot.slane %v1219_v20, %v1215_v12  ;;  %v2668_v29 = vld [vmem:[%s2576_s23 + $0x70] sm:$0xff]   ;;  %v2679_v30 = vld [vmem:[%s2576_s23 + $0x78] sm:$0xff]   ;;  %s3040_s23 = scalar_lea.vmem %s3328_s7, %s2566_s17 }
  0x19   : > { %1229 = vrot.lane.b32.xlu0 %v1224_v21, %s2487_s12 }
  0x1b   : > { %2156 = vmatmul.mubr.msk.bf16.gmra.mrb[4].mxu0 %vm547_vm0, %v2255_v15 }
  0x1c   : > { %2159 = vmatprep.mubr.msk.bf16.mxu0 %vm547_vm0, %v2600_v16  ;;  %2194 = vmatmul.mubr.msk.bf16.gmra.mrb[4].mxu1 %vm979_vm1, %v2255_v15 }
  0x1d   : > { %2197 = vmatprep.mubr.msk.bf16.mxu1 %vm979_vm1, %v2600_v16 }
  0x23   : > { %2160 = vmatmul.mubr.msk.bf16.gmra.mrb[8].mxu0 %vm547_vm0, %v2614_v17 }
  0x24   : > { %2163 = vmatprep.mubr.msk.bf16.mxu0 %vm547_vm0, %v2259_v19  ;;  %2198 = vmatmul.mubr.msk.bf16.gmra.mrb[8].mxu1 %vm979_vm1, %v2614_v17 }
  0x25   : > { %2201 = vmatprep.mubr.msk.bf16.mxu1 %vm979_vm1, %v2259_v19 }
  0x2b   : > { %2164 = vmatmul.mubr.msk.bf16.gmra.mrb[12].mxu0 %vm547_vm0, %v2624_v22 }
  0x2c   : > { %2167 = vmatprep.mubr.msk.bf16.mxu0 %vm547_vm0, %v2627_v23  ;;  %2202 = vmatmul.mubr.msk.bf16.gmra.mrb[12].mxu1 %vm979_vm1, %v2624_v22 }
  0x2d   : > { %2205 = vmatprep.mubr.msk.bf16.mxu1 %vm979_vm1, %v2627_v23 }
  0x33   : > { %2168 = vmatmul.mubr.msk.bf16.gmra.mrb[16].mxu0 %vm547_vm0, %v2637_v24 }
  0x34   : > { %2171 = vmatprep.mubr.msk.bf16.mxu0 %vm547_vm0, %v2640_v25  ;;  %2206 = vmatmul.mubr.msk.bf16.gmra.mrb[16].mxu1 %vm979_vm1, %v2637_v24 }
  0x35   : > { %2209 = vmatprep.mubr.msk.bf16.mxu1 %vm979_vm1, %v2640_v25 }
  0x3b   : > { %2172 = vmatmul.mubr.msk.bf16.gmra.mrb[20].mxu0 %vm547_vm0, %v2651_v26 }
  0x3c   : > { %2175 = vmatprep.mubr.msk.bf16.mxu0 %vm547_vm0, %v2654_v27  ;;  %2210 = vmatmul.mubr.msk.bf16.gmra.mrb[20].mxu1 %vm979_vm1, %v2651_v26 }
  0x3d   : > { %2213 = vmatprep.mubr.msk.bf16.mxu1 %vm979_vm1, %v2654_v27 }
  0x43   : > { %2176 = vmatmul.mubr.msk.bf16.gmra.mrb[24].mxu0 %vm547_vm0, %v2665_v28 }
  0x44   : > { %2179 = vmatprep.mubr.msk.bf16.mxu0 %vm547_vm0, %v2668_v29  ;;  %2214 = vmatmul.mubr.msk.bf16.gmra.mrb[24].mxu1 %vm979_vm1, %v2665_v28 }
  0x45   : > { %2217 = vmatprep.mubr.msk.bf16.mxu1 %vm979_vm1, %v2668_v29 }
  0x4b   : > { %2180 = vmatmul.mubr.msk.bf16.gmra.mrb[28].mxu0 %vm547_vm0, %v2679_v30 }
  0x4c   : > { %2218 = vmatmul.mubr.msk.bf16.gmra.mrb[28].mxu1 %vm979_vm1, %v2679_v30 }
  0x87   : > { %v2689_v31 = vpop.permute.xlu0 %1226 }
  0x88   : > { %v1232_v32 = vsel %vm547_vm0, %v2582_v8, %v2689_v31  ;;  %v1233_v33 = vsel %vm547_vm0, %v2585_v10, %v2689_v31  ;;  %v1235_v34 = vsel %vm547_vm0, %v2255_v15, %v2689_v31  ;;  %v1238_v39 = vsel %vm547_vm0, %v2259_v19, %v2689_v31 }
  0x89   : > { %v1234_v47 = vsel %vm547_vm0, %v2590_v11, %v2689_v31  ;;  %v1239_v53 = vsel %vm547_vm0, %v2624_v22, %v2689_v31  ;;  %v1237_v57 = vsel %vm547_vm0, %v2614_v17, %v2689_v31  ;;  %v1236_v58 = vsel %vm547_vm0, %v2600_v16, %v2689_v31 }
  0x8a   : > { %v1241_v1 = vsel %vm547_vm0, %v2637_v24, %v2689_v31  ;;  %v1240_v5 = vsel %vm547_vm0, %v2627_v23, %v2689_v31  ;;  %v1243_v9 = vsel %vm547_vm0, %v2651_v26, %v2689_v31  ;;  %v1242_v13 = vsel %vm547_vm0, %v2640_v25, %v2689_v31 }
  0x8b   : > { %v2699_v35 = vpop.permute.xlu0 %1229  ;;  %v1245_v17 = vsel %vm547_vm0, %v2665_v28, %v2689_v31  ;;  %v1244_v21 = vsel %vm547_vm0, %v2654_v27, %v2689_v31  ;;  %v1247_v25 = vsel %vm547_vm0, %v2679_v30, %v2689_v31 }
  0x8c   : > { %v2709_v36 = vsel %vm1248_vm3, %v1232_v32, %v2699_v35  ;;  %v2713_v37 = vsel %vm1248_vm3, %v1233_v33, %v2699_v35  ;;  %v2717_v38 = vsel %vm1248_vm3, %v1235_v34, %v2699_v35  ;;  %v2747_v46 = vsel %vm1248_vm3, %v1238_v39, %v2699_v35  ;;  %v2941_v39 = vld [vmem:[%s390_s19] ss:$0 sm:$0xff] }
  0x8d   : > { %v2009_v40 = vcombine.low %v2709_v36, %v2709_v36  ;;  %v2010_v41 = vcombine.high %v2709_v36, %v2709_v36  ;;  %v2011_v42 = vcombine.low %v2713_v37, %v2713_v37  ;;  %v2012_v43 = vcombine.high %v2713_v37, %v2713_v37 }
  0x8e   : > { %v2015_v44 = vcombine.low %v2717_v38, %v2717_v38  ;;  %v2016_v45 = vcombine.high %v2717_v38, %v2717_v38  ;;  %v2021_v48 = vcombine.low %v2747_v46, %v2747_v46  ;;  %v2022_v49 = vcombine.high %v2747_v46, %v2747_v46 }
  0x8f   : > { %1395 = vst.msk [vmem:[%s2705_s15] sm:$0xf] %vm1394_vm4, %v2009_v40  ;;  %1396 = vst.msk [vmem:[%s2705_s15 + $0x4] sm:$0xf] %vm1394_vm4, %v2010_v41  ;;  %v2762_v50 = vsel %vm1248_vm3, %v1234_v47, %v2699_v35  ;;  %v2773_v54 = vsel %vm1248_vm3, %v1239_v53, %v2699_v35  ;;  %v2795_v59 = vsel %vm1248_vm3, %v1237_v57, %v2699_v35 }
  0x90   : > { %1397 = vst.msk [vmem:[%s2705_s15 + $0x8] sm:$0xf] %vm1394_vm4, %v2011_v42  ;;  %1398 = vst.msk [vmem:[%s2705_s15 + $0xc] sm:$0xf] %vm1394_vm4, %v2012_v43  ;;  %v2013_v51 = vcombine.low %v2762_v50, %v2762_v50  ;;  %v2014_v52 = vcombine.high %v2762_v50, %v2762_v50  ;;  %v2023_v55 = vcombine.low %v2773_v54, %v2773_v54 }
  0x91   : > { %1401 = vst.msk [vmem:[%s2705_s15 + $0x18] sm:$0xf] %vm1394_vm4, %v2015_v44  ;;  %1402 = vst.msk [vmem:[%s2705_s15 + $0x1c] sm:$0xf] %vm1394_vm4, %v2016_v45  ;;  %v2024_v56 = vcombine.high %v2773_v54, %v2773_v54  ;;  %v2799_v60 = vsel %vm1248_vm3, %v1236_v58, %v2699_v35  ;;  %v2019_v61 = vcombine.low %v2795_v59, %v2795_v59 }
  0x92   : > { %1407 = vst.msk [vmem:[%s2705_s15 + $0x30] sm:$0xf] %vm1394_vm4, %v2021_v48  ;;  %1408 = vst.msk [vmem:[%s2705_s15 + $0x34] sm:$0xf] %vm1394_vm4, %v2022_v49  ;;  %v2020_v62 = vcombine.high %v2795_v59, %v2795_v59  ;;  %v2017_v63 = vcombine.low %v2799_v60, %v2799_v60  ;;  %v2018_v0 = vcombine.high %v2799_v60, %v2799_v60  ;;  %v2950_v48 = vld [vmem:[%s3327_s6] ss:$0 sm:$0xff] }
  0x93   : > { %1399 = vst.msk [vmem:[%s2705_s15 + $0x10] sm:$0xf] %vm1394_vm4, %v2013_v51  ;;  %1400 = vst.msk [vmem:[%s2705_s15 + $0x14] sm:$0xf] %vm1394_vm4, %v2014_v52  ;;  %v2822_v2 = vsel %vm1248_vm3, %v1241_v1, %v2699_v35  ;;  %v2837_v6 = vsel %vm1248_vm3, %v1240_v5, %v2699_v35  ;;  %v2852_v10 = vsel %vm1248_vm3, %v1243_v9, %v2699_v35  ;;  %v1427_v5 = vunpack.c.l.bf16 %v2709_v36 }
  0x94   : > { %1409 = vst.msk [vmem:[%s2705_s15 + $0x38] sm:$0xf] %vm1394_vm4, %v2023_v55  ;;  %1410 = vst.msk [vmem:[%s2705_s15 + $0x3c] sm:$0xf] %vm1394_vm4, %v2024_v56  ;;  %v2027_v3 = vcombine.low %v2822_v2, %v2822_v2  ;;  %v2028_v4 = vcombine.high %v2822_v2, %v2822_v2  ;;  %v2025_v7 = vcombine.low %v2837_v6, %v2837_v6 }
  0x95   : > { %1405 = vst.msk [vmem:[%s2705_s15 + $0x28] sm:$0xf] %vm1394_vm4, %v2019_v61  ;;  %1406 = vst.msk [vmem:[%s2705_s15 + $0x2c] sm:$0xf] %vm1394_vm4, %v2020_v62  ;;  %v2026_v8 = vcombine.high %v2837_v6, %v2837_v6  ;;  %v2031_v11 = vcombine.low %v2852_v10, %v2852_v10  ;;  %v2032_v12 = vcombine.high %v2852_v10, %v2852_v10 }
  0x96   : > { %1403 = vst.msk [vmem:[%s2705_s15 + $0x20] sm:$0xf] %vm1394_vm4, %v2017_v63  ;;  %1404 = vst.msk [vmem:[%s2705_s15 + $0x24] sm:$0xf] %vm1394_vm4, %v2018_v0  ;;  %v2867_v14 = vsel %vm1248_vm3, %v1242_v13, %v2699_v35  ;;  %v2882_v18 = vsel %vm1248_vm3, %v1245_v17, %v2699_v35  ;;  %v2897_v22 = vsel %vm1248_vm3, %v1244_v21, %v2699_v35  ;;  %v1430_v17 = vunpack.c.h.bf16 %v2713_v37 }
  0x97   : > { %1413 = vst.msk [vmem:[%s2705_s15 + $0x48] sm:$0xf] %vm1394_vm4, %v2027_v3  ;;  %1414 = vst.msk [vmem:[%s2705_s15 + $0x4c] sm:$0xf] %vm1394_vm4, %v2028_v4  ;;  %v2029_v15 = vcombine.low %v2867_v14, %v2867_v14  ;;  %v2030_v16 = vcombine.high %v2867_v14, %v2867_v14  ;;  %v2035_v19 = vcombine.low %v2882_v18, %v2882_v18 }
  0x98   : > { %1411 = vst.msk [vmem:[%s2705_s15 + $0x40] sm:$0xf] %vm1394_vm4, %v2025_v7  ;;  %1412 = vst.msk [vmem:[%s2705_s15 + $0x44] sm:$0xf] %vm1394_vm4, %v2026_v8  ;;  %v2036_v20 = vcombine.high %v2882_v18, %v2882_v18  ;;  %v2033_v23 = vcombine.low %v2897_v22, %v2897_v22  ;;  %v2034_v24 = vcombine.high %v2897_v22, %v2897_v22 }
  0x99   : > { %1417 = vst.msk [vmem:[%s2705_s15 + $0x58] sm:$0xf] %vm1394_vm4, %v2031_v11  ;;  %1418 = vst.msk [vmem:[%s2705_s15 + $0x5c] sm:$0xf] %vm1394_vm4, %v2032_v12  ;;  %v2912_v26 = vsel %vm1248_vm3, %v1247_v25, %v2699_v35  ;;  %v1246_v32 = vsel %vm547_vm0, %v2668_v29, %v2689_v31  ;;  %v1428_v11 = vunpack.c.h.bf16 %v2709_v36 }
  0x9a   : > { %1415 = vst.msk [vmem:[%s2705_s15 + $0x50] sm:$0xf] %vm1394_vm4, %v2029_v15  ;;  %1416 = vst.msk [vmem:[%s2705_s15 + $0x54] sm:$0xf] %vm1394_vm4, %v2030_v16  ;;  %v2039_v27 = vcombine.low %v2912_v26, %v2912_v26  ;;  %v2040_v28 = vcombine.high %v2912_v26, %v2912_v26  ;;  %v2927_v30 = vsel %vm1248_vm3, %v1246_v32, %v2699_v35  ;;  %v1429_v15 = vunpack.c.l.bf16 %v2713_v37 }
  0x9b   : > { %1421 = vst.msk [vmem:[%s2705_s15 + $0x68] sm:$0xf] %vm1394_vm4, %v2035_v19  ;;  %1422 = vst.msk [vmem:[%s2705_s15 + $0x6c] sm:$0xf] %vm1394_vm4, %v2036_v20  ;;  %v2037_v33 = vcombine.low %v2927_v30, %v2927_v30  ;;  %v2038_v34 = vcombine.high %v2927_v30, %v2927_v30  ;;  %v1433_v19 = vunpack.c.l.bf16 %v2717_v38  ;;  %v1431_v32 = vunpack.c.l.bf16 %v2762_v50 }
  0x9c   : > { %1419 = vst.msk [vmem:[%s2705_s15 + $0x60] sm:$0xf] %vm1394_vm4, %v2033_v23  ;;  %1420 = vst.msk [vmem:[%s2705_s15 + $0x64] sm:$0xf] %vm1394_vm4, %v2034_v24  ;;  %v1434_v23 = vunpack.c.h.bf16 %v2717_v38  ;;  %v1439_v24 = vunpack.c.l.bf16 %v2747_v46 }
  0x9d   : > { %1425 = vst.msk [vmem:[%s2705_s15 + $0x78] sm:$0xf] %vm1394_vm4, %v2039_v27  ;;  %1426 = vst.msk [vmem:[%s2705_s15 + $0x7c] sm:$0xf] %vm1394_vm4, %v2040_v28 }
  0x9e   : > { %1423 = vst.msk [vmem:[%s2705_s15 + $0x70] sm:$0xf] %vm1394_vm4, %v2037_v33  ;;  %1424 = vst.msk [vmem:[%s2705_s15 + $0x74] sm:$0xf] %vm1394_vm4, %v2038_v34  ;;  %v1432_v33 = vunpack.c.h.bf16 %v2762_v50 }
  0xe6   : > { %v2153_v29 = vpop.f32.mrb[0].mxu0 }
  0xe7   : > { %v639_v31 = vadd.f32 %v2153_v29, %v2941_v39  ;;  %v630_v35 = vpop.f32.mrb[1].mxu0  ;;  %v2191_v52 = vpop.f32.mrb[0].mxu1 }
  0xe8   : > { %v631_v40 = vadd.f32 %v2941_v39, %v630_v35  ;;  %v2154_v41 = vpop.f32.mrb[2].mxu0  ;;  %v1059_v53 = vadd.f32 %v2191_v52, %v2950_v48  ;;  %v1050_v55 = vpop.f32.mrb[1].mxu1 }
  0xe9   : > { %v1959_v42 = vmul.f32 -1.442695, %v639_v31  ;;  %v642_v43 = vadd.f32 %v2154_v41, %v2941_v39  ;;  %v633_v44 = vpop.f32.mrb[3].mxu0  ;;  %v1051_v57 = vadd.f32 %v2950_v48, %v1050_v55  ;;  %v2192_v58 = vpop.f32.mrb[2].mxu1  ;;  %v1435_v41 = vunpack.c.l.bf16 %v2799_v60 }
  0xea   : > { %v1957_v45 = vmul.f32 -1.442695, %v631_v40  ;;  %v634_v47 = vadd.f32 %v2941_v39, %v633_v44  ;;  %v1062_v63 = vadd.f32 %v2192_v58, %v2950_v48  ;;  %v1053_v0 = vpop.f32.mrb[3].mxu1  ;;  %v1437_v40 = vunpack.c.l.bf16 %v2795_v59 }
  0xeb   : > { %2269 = vpow2.f32 %v1959_v42  ;;  %v1960_v49 = vmul.f32 -1.442695, %v642_v43  ;;  %v1054_v4 = vadd.f32 %v2950_v48, %v1053_v0 }
  0xec   : > { %2271 = vpow2.f32 %v1957_v45  ;;  %v1958_v51 = vmul.f32 -1.442695, %v634_v47 }
  0xed   : > { %2273 = vpow2.f32 %v1960_v49  ;;  %v1438_v49 = vunpack.c.h.bf16 %v2795_v59 }
  0xee   : > { %2275 = vpow2.f32 %v1958_v51  ;;  %v2157_v56 = vpop.f32.mrb[4].mxu0 }
  0xef   : > { %v655_v61 = vadd.f32 %v2157_v56, %v2941_v39  ;;  %v646_v62 = vpop.f32.mrb[5].mxu0  ;;  %2277 = vtanh.f32 %v1059_v53  ;;  %v2195_v21 = vpop.f32.mrb[4].mxu1 }
  0xf0   : > { %v647_v1 = vadd.f32 %v2941_v39, %v646_v62  ;;  %v2158_v3 = vpop.f32.mrb[6].mxu0  ;;  %2279 = vtanh.f32 %v1051_v57  ;;  %v1075_v27 = vadd.f32 %v2195_v21, %v2950_v48  ;;  %v1066_v28 = vpop.f32.mrb[5].mxu1 }
  0xf1   : > { %v1963_v7 = vmul.f32 -1.442695, %v655_v61  ;;  %v658_v8 = vadd.f32 %v2158_v3, %v2941_v39  ;;  %v649_v9 = vpop.f32.mrb[7].mxu0  ;;  %2281 = vtanh.f32 %v1062_v63  ;;  %v2196_v35 = vpop.f32.mrb[6].mxu1 }
  0xf2   : > { %v1961_v12 = vmul.f32 -1.442695, %v647_v1  ;;  %v650_v13 = vadd.f32 %v2941_v39, %v649_v9  ;;  %2283 = vtanh.f32 %v1054_v4  ;;  %v1069_v47 = vpop.f32.mrb[7].mxu1  ;;  %v1436_v4 = vunpack.c.h.bf16 %v2799_v60 }
  0xf3   : > { %2285 = vpow2.f32 %v1963_v7  ;;  %v1964_v16 = vmul.f32 -1.442695, %v658_v8 }
  0xf4   : > { %2287 = vpow2.f32 %v1961_v12  ;;  %v1962_v20 = vmul.f32 -1.442695, %v650_v13  ;;  %v1441_v12 = vunpack.c.l.bf16 %v2773_v54 }
  0xf5   : > { %v2270_v25 = vpop.eup %2269  ;;  %2289 = vpow2.f32 %v1964_v16 }
  0xf6   : > { %v2272_v34 = vpop.eup %2271  ;;  %v855_v29 = vadd.f32 1.0, %v2270_v25  ;;  %2291 = vpow2.f32 %v1962_v20  ;;  %v2161_v31 = vpop.f32.mrb[8].mxu0 }
  0xf7   : > { %v2274_v42 = vpop.eup %2273  ;;  %v853_v43 = vadd.f32 1.0, %v2272_v34  ;;  %v671_v44 = vadd.f32 %v2161_v31, %v2941_v39  ;;  %v662_v45 = vpop.f32.mrb[9].mxu0  ;;  %2293 = vtanh.f32 %v1075_v27  ;;  %v1067_v34 = vadd.f32 %v2950_v48, %v1066_v28 }
  0xf8   : > { %v2276_v51 = vpop.eup %2275  ;;  %2295 = vrcp.f32 %v855_v29  ;;  %v856_v52 = vadd.f32 1.0, %v2274_v42  ;;  %v663_v53 = vadd.f32 %v2941_v39, %v662_v45  ;;  %v2162_v55 = vpop.f32.mrb[10].mxu0 }
  0xf9   : > { %v2976_v57 = vpop.eup %2277  ;;  %2297 = vrcp.f32 %v853_v43  ;;  %v854_v58 = vadd.f32 1.0, %v2276_v51  ;;  %v1967_v61 = vmul.f32 -1.442695, %v671_v44  ;;  %v674_v62 = vadd.f32 %v2162_v55, %v2941_v39  ;;  %v665_v63 = vpop.f32.mrb[11].mxu0 }
  0xfa   : > { %v2979_v0 = vpop.eup %2279  ;;  %2299 = vrcp.f32 %v856_v52  ;;  %v1965_v1 = vmul.f32 -1.442695, %v663_v53  ;;  %v666_v3 = vadd.f32 %v2941_v39, %v665_v63  ;;  %v2199_v20 = vpop.f32.mrb[8].mxu1  ;;  %v1078_v51 = vadd.f32 %v2196_v35, %v2950_v48 }
  0xfb   : > { %v2983_v7 = vpop.eup %2281  ;;  %2301 = vrcp.f32 %v854_v58  ;;  %v1968_v8 = vmul.f32 -1.442695, %v674_v62  ;;  %v1082_v29 = vpop.f32.mrb[9].mxu1  ;;  %v1070_v52 = vadd.f32 %v2950_v48, %v1069_v47  ;;  %v2998_v62 = vadd.f32 %v2199_v20, %v2950_v48 }
  0xfc   : > { %v2987_v13 = vpop.eup %2283  ;;  %2303 = vpow2.f32 %v1967_v61  ;;  %v1966_v16 = vmul.f32 -1.442695, %v666_v3  ;;  %v2200_v53 = vpop.f32.mrb[10].mxu1  ;;  %v3004_v47 = vadd.f32 %v2950_v48, %v1082_v29 }
  0xfd   : > { %v2286_v27 = vpop.eup %2285  ;;  %2305 = vpow2.f32 %v1965_v1  ;;  %v3000_v63 = vpop.f32.mrb[11].mxu1 }
  0xfe   : > { %v2288_v43 = vpop.eup %2287  ;;  %v859_v44 = vadd.f32 1.0, %v2286_v27  ;;  %2307 = vpow2.f32 %v1968_v8  ;;  %v2165_v45 = vpop.f32.mrb[12].mxu0 }
  0xff   : > { %v2290_v55 = vpop.eup %2289  ;;  %v857_v58 = vadd.f32 1.0, %v2288_v43  ;;  %2309 = vpow2.f32 %v1966_v16  ;;  %v687_v61 = vadd.f32 %v2165_v45, %v2941_v39  ;;  %v678_v28 = vpop.f32.mrb[13].mxu0 }
 0x100   : > { %v2292_v1 = vpop.eup %2291  ;;  %2311 = vrcp.f32 %v859_v44  ;;  %v860_v3 = vadd.f32 1.0, %v2290_v55  ;;  %v679_v8 = vadd.f32 %v2941_v39, %v678_v28  ;;  %v2166_v35 = vpop.f32.mrb[14].mxu0  ;;  %v3011_v55 = vadd.f32 %v2200_v53, %v2950_v48 }
 0x101   : > { %v3006_v27 = vpop.eup %2293  ;;  %2313 = vrcp.f32 %v857_v58  ;;  %v858_v16 = vadd.f32 1.0, %v2292_v1  ;;  %v1971_v43 = vmul.f32 -1.442695, %v687_v61  ;;  %v690_v45 = vadd.f32 %v2166_v35, %v2941_v39  ;;  %v681_v20 = vpop.f32.mrb[15].mxu0 }
 0x102   : > { %v2296_v42 = vpop.eup %2295  ;;  %2315 = vrcp.f32 %v860_v3  ;;  %v1969_v31 = vmul.f32 -1.442695, %v679_v8  ;;  %v682_v44 = vadd.f32 %v2941_v39, %v681_v20  ;;  %v3021_v35 = vpop.f32.mrb[12].mxu1 }
 0x103   : > { %v2298_v28 = vpop.eup %2297  ;;  %2317 = vrcp.f32 %v858_v16  ;;  %v1493_v29 = vsub.f32 1.0, %v2296_v42  ;;  %v1461_v25 = vmul.f32 %v2296_v42, %v1429_v15  ;;  %v3015_v58 = vmul.f32 -1.442695, %v690_v45  ;;  %v3026_v42 = vpop.f32.mrb[13].mxu1 }
 0x104   : > { %v2300_v61 = vpop.eup %2299  ;;  %v1491_v1 = vsub.f32 1.0, %v2298_v28  ;;  %2319 = vtanh.f32 %v1067_v34  ;;  %v1459_v3 = vmul.f32 %v2298_v28, %v1427_v5  ;;  %v3019_v8 = vmul.f32 -1.442695, %v682_v44  ;;  %v3031_v28 = vpop.f32.mrb[14].mxu1 }
 0x105   : > { %v2302_v53 = vpop.eup %2301  ;;  %v1525_v20 = vmul.f32 %v2976_v57, %v1493_v29  ;;  %v1494_v16 = vsub.f32 1.0, %v2300_v61  ;;  %2321 = vpow2.f32 %v1971_v43  ;;  %v1462_v15 = vmul.f32 %v2300_v61, %v1430_v17  ;;  %v3034_v61 = vpop.f32.mrb[15].mxu1 }
 0x106   : > { %v2304_v45 = vpop.eup %2303  ;;  %v1523_v34 = vmul.f32 %v2979_v0, %v1491_v1  ;;  %v1492_v21 = vsub.f32 1.0, %v2302_v53  ;;  %2323 = vtanh.f32 %v1078_v51  ;;  %v1460_v5 = vmul.f32 %v2302_v53, %v1428_v11  ;;  %v2169_v44 = vpop.f32.mrb[16].mxu0 }
 0x107   : > { %v2306_v57 = vpop.eup %2305  ;;  %v863_v29 = vadd.f32 1.0, %v2304_v45  ;;  %v1526_v43 = vmul.f32 %v2983_v7, %v1494_v16  ;;  %v1557_v37 = vadd.f32 %v1525_v20, %v1461_v25  ;;  %2325 = vpow2.f32 %v1969_v31  ;;  %v694_v17 = vpop.f32.mrb[17].mxu0 }
 0x108   : > { %v2308_v9 = vpop.eup %2307  ;;  %v861_v36 = vadd.f32 1.0, %v2306_v57  ;;  %v1524_v11 = vmul.f32 %v2987_v13, %v1492_v21  ;;  %v1555_v0 = vadd.f32 %v1523_v34, %v1459_v3  ;;  %2327 = vtanh.f32 %v1070_v52  ;;  %v2170_v51 = vpop.f32.mrb[18].mxu0 }
 0x109   : > { %v2310_v1 = vpop.eup %2309  ;;  %2329 = vrcp.f32 %v863_v29  ;;  %v864_v7 = vadd.f32 1.0, %v2308_v9  ;;  %v1558_v25 = vadd.f32 %v1526_v43, %v1462_v15  ;;  %v2080_v31 = vpack.c.bf16 %v1557_v37, %v1557_v37  ;;  %v3043_v53 = vpop.f32.mrb[19].mxu0 }
 0x10a   : > { %v2312_v20 = vpop.eup %2311  ;;  %2331 = vrcp.f32 %v861_v36  ;;  %v862_v16 = vadd.f32 1.0, %v2310_v1  ;;  %v1556_v45 = vadd.f32 %v1524_v11, %v1460_v5  ;;  %v2078_v56 = vpack.c.bf16 %v1555_v0, %v1555_v0  ;;  %v3053_v5 = vpop.f32.mrb[16].mxu1 }
 0x10b   : > { %v2314_v57 = vpop.eup %2313  ;;  %2333 = vrcp.f32 %v864_v7  ;;  %v1497_v13 = vsub.f32 1.0, %v2312_v20  ;;  %v1465_v21 = vmul.f32 %v2312_v20, %v1433_v19  ;;  %v2081_v52 = vpack.c.bf16 %v1558_v25, %v1558_v25  ;;  %1717 = vst.msk [vmem:[%s3040_s23 + $0x8] sm:$0xf] %vm1394_vm4, %v2080_v31  ;;  %v3061_v36 = vpop.f32.mrb[17].mxu1 }
 0x10c   : > { %v2316_v9 = vpop.eup %2315  ;;  %2335 = vrcp.f32 %v862_v16  ;;  %v1495_v3 = vsub.f32 1.0, %v2314_v57  ;;  %v2079_v15 = vpack.c.bf16 %v1556_v45, %v1556_v45  ;;  %1715 = vst.msk [vmem:[%s3040_s23] sm:$0xf] %vm1394_vm4, %v2078_v56  ;;  %v1463_v34 = vmul.f32 %v2314_v57, %v1431_v32  ;;  %v3071_v38 = vpop.f32.mrb[18].mxu1 }
 0x10d   : > { %v2318_v29 = vpop.eup %2317  ;;  %v1529_v43 = vmul.f32 %v3006_v27, %v1497_v13  ;;  %v1498_v37 = vsub.f32 1.0, %v2316_v9  ;;  %v1466_v19 = vmul.f32 %v2316_v9, %v1434_v23  ;;  %1718 = vst.msk [vmem:[%s3040_s23 + $0xc] sm:$0xf] %vm1394_vm4, %v2081_v52  ;;  %2337 = vpow2.f32 %v3015_v58  ;;  %v3077_v50 = vpop.f32.mrb[19].mxu1 }
 0x10e   : > { %v2320_v11 = vpop.eup %2319  ;;  %1716 = vst.msk [vmem:[%s3040_s23 + $0x4] sm:$0xf] %vm1394_vm4, %v2079_v15  ;;  %v1464_v32 = vmul.f32 %v2318_v29, %v1432_v33  ;;  %v1496_v56 = vsub.f32 1.0, %v2318_v29  ;;  %2339 = vpow2.f32 %v3019_v8  ;;  %v703_v27 = vadd.f32 %v2169_v44, %v2941_v39  ;;  %v3069_v0 = vpop.f32.mrb[20].mxu0 }
 0x10f   : > { %v2322_v23 = vpop.eup %2321  ;;  %v1527_v1 = vmul.f32 %v2320_v11, %v1495_v3  ;;  %v1561_v58 = vadd.f32 %v1529_v43, %v1465_v21  ;;  %2341 = vtanh.f32 %v2998_v62  ;;  %v695_v7 = vadd.f32 %v2941_v39, %v694_v17  ;;  %v3075_v25 = vpop.f32.mrb[21].mxu0 }
 0x110   : > { %v2324_v33 = vpop.eup %2323  ;;  %v867_v31 = vadd.f32 1.0, %v2322_v23  ;;  %2343 = vtanh.f32 %v3004_v47  ;;  %v1975_v8 = vmul.f32 -1.442695, %v703_v27  ;;  %v706_v44 = vadd.f32 %v2170_v51, %v2941_v39  ;;  %v3081_v20 = vpop.f32.mrb[22].mxu0 }
 0x111   : > { %v2326_v16 = vpop.eup %2325  ;;  %v1530_v45 = vmul.f32 %v2324_v33, %v1498_v37  ;;  %v2084_v57 = vpack.c.bf16 %v1561_v58, %v1561_v58  ;;  %v1559_v62 = vadd.f32 %v1527_v1, %v1463_v34  ;;  %2345 = vtanh.f32 %v3011_v55  ;;  %v3084_v17 = vpop.f32.mrb[23].mxu0 }
 0x112   : > { %v2328_v13 = vpop.eup %2327  ;;  %2347 = vrcp.f32 %v867_v31  ;;  %v865_v21 = vadd.f32 1.0, %v2326_v16  ;;  %v1973_v52 = vmul.f32 -1.442695, %v695_v7  ;;  %v1086_v47 = vadd.f32 %v2950_v48, %v3000_v63  ;;  %v3094_v37 = vpop.f32.mrb[20].mxu1 }
 0x113   : > { %v2330_v9 = vpop.eup %2329  ;;  %v1562_v51 = vadd.f32 %v1530_v45, %v1466_v19  ;;  %1721 = vst.msk [vmem:[%s3040_s23 + $0x18] sm:$0xf] %vm1394_vm4, %v2084_v57  ;;  %v1528_v3 = vmul.f32 %v2328_v13, %v1496_v56  ;;  %v2082_v15 = vpack.c.bf16 %v1559_v62, %v1559_v62  ;;  %2349 = vpow2.f32 %v1975_v8  ;;  %v3100_v23 = vpop.f32.mrb[21].mxu1 }
 0x114   : > { %v2332_v34 = vpop.eup %2331  ;;  %2351 = vrcp.f32 %v865_v21  ;;  %v1469_v55 = vmul.f32 %v2330_v9, %v1437_v40  ;;  %v1976_v29 = vmul.f32 -1.442695, %v706_v44  ;;  %v698_v43 = vadd.f32 %v2941_v39, %v3043_v53  ;;  %v3108_v33 = vpop.f32.mrb[22].mxu1 }
 0x115   : > { %v2334_v63 = vpop.eup %2333  ;;  %v2085_v11 = vpack.c.bf16 %v1562_v51, %v1562_v51  ;;  %v1560_v19 = vadd.f32 %v1528_v3, %v1464_v32  ;;  %1719 = vst.msk [vmem:[%s3040_s23 + $0x10] sm:$0xf] %vm1394_vm4, %v2082_v15  ;;  %v1501_v56 = vsub.f32 1.0, %v2330_v9  ;;  %v1467_v27 = vmul.f32 %v2332_v34, %v1435_v41 }
 0x116   : > { %v3102_v1 = vpop.eup %2335  ;;  %v1499_v40 = vsub.f32 1.0, %v2332_v34  ;;  %v1470_v53 = vmul.f32 %v2334_v63, %v1438_v49  ;;  %2353 = vpow2.f32 %v1973_v52  ;;  %v1974_v58 = vmul.f32 -1.442695, %v698_v43  ;;  %v3106_v7 = vpop.f32.mrb[24].mxu0 }
 0x117   : > { %v2338_v32 = vpop.eup %2337  ;;  %1722 = vst.msk [vmem:[%s3040_s23 + $0x1c] sm:$0xf] %vm1394_vm4, %v2085_v11  ;;  %v2083_v31 = vpack.c.bf16 %v1560_v19, %v1560_v19  ;;  %v1502_v41 = vsub.f32 1.0, %v2334_v63  ;;  %2355 = vtanh.f32 %v1086_v47  ;;  %v3115_v8 = vmul.f32 %v3102_v1, %v1436_v4  ;;  %v3117_v59 = vpop.f32.mrb[25].mxu0 }
 0x118   : > { %v3119_v49 = vpop.f32.mrb[23].mxu1  ;;  %v2340_v44 = vpop.eup %2339  ;;  %v868_v16 = vadd.f32 1.0, %v2338_v32  ;;  %v1500_v45 = vsub.f32 1.0, %v3102_v1  ;;  %2357 = vpow2.f32 %v1976_v29  ;;  %v1107_v57 = vadd.f32 %v3021_v35, %v2950_v48 }
 0x119   : > { %v3124_v62 = vpop.f32.mrb[26].mxu0  ;;  %v2342_v13 = vpop.eup %2341  ;;  %1720 = vst.msk [vmem:[%s3040_s23 + $0x14] sm:$0xf] %vm1394_vm4, %v2083_v31  ;;  %v866_v60 = vadd.f32 1.0, %v2340_v44  ;;  %2359 = vpow2.f32 %v1974_v58  ;;  %v1099_v4 = vadd.f32 %v2950_v48, %v3026_v42  ;;  %v719_v21 = vadd.f32 %v3069_v0, %v2941_v39 }
 0x11a   : > { %v3132_v52 = vpop.f32.mrb[27].mxu0  ;;  %v2344_v47 = vpop.eup %2343  ;;  %2361 = vrcp.f32 %v868_v16  ;;  %v1533_v9 = vmul.f32 %v2342_v13, %v1501_v56  ;;  %v1110_v35 = vadd.f32 %v3031_v28, %v2950_v48  ;;  %v711_v51 = vadd.f32 %v2941_v39, %v3075_v25 }
 0x11b   : > { %v2346_v3 = vpop.eup %2345  ;;  %2363 = vrcp.f32 %v866_v60  ;;  %v1531_v15 = vmul.f32 %v2344_v47, %v1499_v40  ;;  %v1979_v34 = vmul.f32 -1.442695, %v719_v21  ;;  %v1102_v42 = vadd.f32 %v2950_v48, %v3034_v61  ;;  %v3144_v11 = vpop.f32.mrb[24].mxu1 }
 0x11c   : > { %v3140_v29 = vpop.eup %2347  ;;  %v1565_v0 = vadd.f32 %v1533_v9, %v1469_v55  ;;  %v1534_v43 = vmul.f32 %v2346_v3, %v1502_v41  ;;  %2365 = vtanh.f32 %v1107_v57  ;;  %v722_v63 = vadd.f32 %v3081_v20, %v2941_v39  ;;  %v3151_v61 = vpop.f32.mrb[25].mxu1 }
 0x11d   : > { %v2350_v28 = vpop.eup %2349  ;;  %v1563_v19 = vadd.f32 %v1531_v15, %v1467_v27  ;;  %v3149_v25 = vmul.f32 %v3140_v29, %v1441_v12  ;;  %2367 = vtanh.f32 %v1099_v4  ;;  %v1977_v56 = vmul.f32 -1.442695, %v711_v51  ;;  %v3157_v27 = vpop.f32.mrb[26].mxu1 }
 0x11e   : > { %v3153_v55 = vpop.eup %2351  ;;  %v2088_v1 = vpack.c.bf16 %v1565_v0, %v1565_v0  ;;  %v871_v40 = vadd.f32 1.0, %v2350_v28  ;;  %v1566_v58 = vadd.f32 %v1534_v43, %v1470_v53  ;;  %2369 = vpow2.f32 %v1979_v34  ;;  %v3155_v20 = vpop.f32.mrb[28].mxu0 }
 0x11f   : > { %v3162_v12 = vmul.f32 %v3153_v55, %v1439_v24  ;;  %v2086_v32 = vpack.c.bf16 %v1563_v19, %v1563_v19  ;;  %v1449_v31 = vunpack.c.l.bf16 %v2852_v10  ;;  %2371 = vtanh.f32 %v1110_v35  ;;  %v3165_v41 = vpop.f32.mrb[29].mxu0  ;;  %v3167_v44 = vpop.f32.mrb[27].mxu1 }
 0x120   : > { %v2354_v53 = vpop.eup %2353  ;;  %1725 = vst.msk [vmem:[%s3040_s23 + $0x28] sm:$0xf] %vm1394_vm4, %v2088_v1  ;;  %2373 = vrcp.f32 %v871_v40  ;;  %v2089_v16 = vpack.c.bf16 %v1566_v58, %v1566_v58  ;;  %v1980_v57 = vmul.f32 -1.442695, %v722_v63  ;;  %v714_v13 = vadd.f32 %v2941_v39, %v3084_v17  ;;  %v3173_v24 = vpop.f32.mrb[30].mxu0 }
 0x121   : > { %v2356_v60 = vpop.eup %2355  ;;  %1723 = vst.msk [vmem:[%s3040_s23 + $0x20] sm:$0xf] %vm1394_vm4, %v2086_v32  ;;  %v869_v4 = vadd.f32 1.0, %v2354_v53  ;;  %v1505_v21 = vsub.f32 1.0, %v3140_v29  ;;  %2375 = vpow2.f32 %v1977_v56  ;;  %v1447_v47 = vunpack.c.l.bf16 %v2867_v14  ;;  %v3179_v9 = vpop.f32.mrb[31].mxu0 }
 0x122   : > { %v2358_v35 = vpop.eup %2357  ;;  %1726 = vst.msk [vmem:[%s3040_s23 + $0x2c] sm:$0xf] %vm1394_vm4, %v2089_v16  ;;  %v1532_v51 = vmul.f32 %v2356_v60, %v1500_v45  ;;  %v1503_v3 = vsub.f32 1.0, %v3153_v55  ;;  %2377 = vtanh.f32 %v1102_v42  ;;  %v735_v17 = vadd.f32 %v3106_v7, %v2941_v39  ;;  %v3191_v19 = vpop.f32.mrb[28].mxu1 }
 0x123   : > { %v2360_v15 = vpop.eup %2359  ;;  %2379 = vrcp.f32 %v869_v4  ;;  %v872_v34 = vadd.f32 1.0, %v2358_v35  ;;  %v1978_v0 = vmul.f32 -1.442695, %v714_v13  ;;  %v1123_v29 = vadd.f32 %v3053_v5, %v2950_v48  ;;  %v3197_v1 = vpop.f32.mrb[29].mxu1 }
 0x124   : > { %v2362_v43 = vpop.eup %2361  ;;  %v1564_v63 = vadd.f32 %v1532_v51, %v3115_v8  ;;  %v870_v28 = vadd.f32 1.0, %v2360_v15  ;;  %2381 = vpow2.f32 %v1980_v57  ;;  %v727_v45 = vadd.f32 %v2941_v39, %v3117_v59  ;;  %v3201_v53 = vpop.f32.mrb[30].mxu1 }
 0x125   : > { %v2364_v42 = vpop.eup %2363  ;;  %v3330_v7 = vunpack.c.h.bf16 %v2773_v54  ;;  %2383 = vrcp.f32 %v872_v34  ;;  %v1115_v55 = vadd.f32 %v2950_v48, %v3061_v36  ;;  %v1983_v5 = vmul.f32 -1.442695, %v735_v17  ;;  %v3207_v13 = vpop.f32.mrb[31].mxu1 }
 0x126   : > { %v2366_v8 = vpop.eup %2365  ;;  %v3331_v40 = vunpack.c.h.bf16 %v2747_v46  ;;  %v2087_v32 = vpack.c.bf16 %v1564_v63, %v1564_v63  ;;  %2385 = vrcp.f32 %v870_v28  ;;  %v1506_v59 = vsub.f32 1.0, %v2362_v43 }
 0x127   : > { %v1474_v56 = vmul.f32 %v2362_v43, %v3330_v7  ;;  %v2368_v16 = vpop.eup %2367  ;;  %v1537_v54 = vmul.f32 %v2366_v8, %v1505_v21  ;;  %2387 = vpow2.f32 %v1978_v0  ;;  %v1126_v57 = vadd.f32 %v3071_v38, %v2950_v48 }
 0x128   : > { %v1472_v58 = vmul.f32 %v2364_v42, %v3331_v40  ;;  %v738_v36 = vadd.f32 %v3124_v62, %v2941_v39  ;;  %v2370_v60 = vpop.eup %2369  ;;  %1724 = vst.msk [vmem:[%s3040_s23 + $0x24] sm:$0xf] %vm1394_vm4, %v2087_v32  ;;  %v1535_v46 = vmul.f32 %v2368_v16, %v1503_v3  ;;  %v1504_v4 = vsub.f32 1.0, %v2364_v42 }
 0x129   : > { %2389 = vtanh.f32 %v1123_v29  ;;  %v1981_v35 = vmul.f32 -1.442695, %v727_v45  ;;  %v2372_v51 = vpop.eup %2371  ;;  %v1569_v17 = vadd.f32 %v1537_v54, %v3149_v25  ;;  %v875_v21 = vadd.f32 1.0, %v2370_v60 }
 0x12a   : > { %2391 = vtanh.f32 %v1115_v55  ;;  %v730_v38 = vadd.f32 %v2941_v39, %v3132_v52  ;;  %v2374_v15 = vpop.eup %2373  ;;  %v1567_v62 = vadd.f32 %v1535_v46, %v3162_v12  ;;  %v1538_v34 = vmul.f32 %v2372_v51, %v1506_v59 }
 0x12b   : > { %2393 = vpow2.f32 %v1983_v5  ;;  %v1118_v3 = vadd.f32 %v2950_v48, %v3077_v50  ;;  %v2376_v0 = vpop.eup %2375  ;;  %v3332_v29 = vunpack.c.l.bf16 %v2822_v2  ;;  %v2092_v63 = vpack.c.bf16 %v1569_v17, %v1569_v17 }
 0x12c   : > { %2395 = vrcp.f32 %v875_v21  ;;  %v1984_v25 = vmul.f32 -1.442695, %v738_v36  ;;  %v2378_v28 = vpop.eup %2377  ;;  %v2090_v45 = vpack.c.bf16 %v1567_v62, %v1567_v62  ;;  %v1570_v52 = vadd.f32 %v1538_v34, %v1474_v56 }
 0x12d   : > { %v1477_v43 = vmul.f32 %v2374_v15, %v3332_v29  ;;  %v873_v42 = vadd.f32 1.0, %v2376_v0  ;;  %2397 = vtanh.f32 %v1126_v57  ;;  %v2380_v7 = vpop.eup %2379  ;;  %1729 = vst.msk [vmem:[%s3040_s23 + $0x38] sm:$0xf] %vm1394_vm4, %v2092_v63  ;;  %v1536_v12 = vmul.f32 %v2378_v28, %v1504_v4 }
 0x12e   : > { %2399 = vpow2.f32 %v1981_v35  ;;  %v1982_v50 = vmul.f32 -1.442695, %v730_v38  ;;  %v1139_v55 = vadd.f32 %v3094_v37, %v2950_v48  ;;  %v2382_v5 = vpop.eup %2381  ;;  %v3333_v8 = vunpack.c.l.bf16 %v2837_v6  ;;  %1727 = vst.msk [vmem:[%s3040_s23 + $0x30] sm:$0xf] %vm1394_vm4, %v2090_v45 }
 0x12f   : > { %v2093_v32 = vpack.c.bf16 %v1570_v52, %v1570_v52  ;;  %2401 = vrcp.f32 %v873_v42  ;;  %v751_v56 = vadd.f32 %v3155_v20, %v2941_v39  ;;  %v2384_v59 = vpop.eup %2383  ;;  %v1568_v16 = vadd.f32 %v1536_v12, %v1472_v58 }
 0x130   : > { %v1475_v40 = vmul.f32 %v2380_v7, %v3333_v8  ;;  %v876_v54 = vadd.f32 1.0, %v2382_v5  ;;  %v1509_v57 = vsub.f32 1.0, %v2374_v15  ;;  %2403 = vtanh.f32 %v1118_v3  ;;  %v2386_v36 = vpop.eup %2385 }
 0x131   : > { %v3334_v60 = vunpack.c.h.bf16 %v2822_v2  ;;  %1730 = vst.msk [vmem:[%s3040_s23 + $0x3c] sm:$0xf] %vm1394_vm4, %v2093_v32  ;;  %v1450_v46 = vunpack.c.h.bf16 %v2852_v10  ;;  %v1507_v4 = vsub.f32 1.0, %v2380_v7  ;;  %2405 = vpow2.f32 %v1984_v25  ;;  %v2388_v35 = vpop.eup %2387 }
 0x132   : > { %v3335_v51 = vunpack.c.h.bf16 %v2837_v6  ;;  %v2091_v17 = vpack.c.bf16 %v1568_v16, %v1568_v16  ;;  %2407 = vrcp.f32 %v876_v54  ;;  %v1131_v58 = vadd.f32 %v2950_v48, %v3100_v23 }
 0x133   : > { %v1478_v37 = vmul.f32 %v2384_v59, %v3334_v60  ;;  %v2390_v21 = vpop.eup %2389  ;;  %v874_v38 = vadd.f32 1.0, %v2388_v35  ;;  %2409 = vpow2.f32 %v1982_v50  ;;  %v1987_v2 = vmul.f32 -1.442695, %v751_v56 }
 0x134   : > { %v1476_v20 = vmul.f32 %v2386_v36, %v3335_v51  ;;  %v743_v15 = vadd.f32 %v2941_v39, %v3165_v41  ;;  %v2392_v62 = vpop.eup %2391  ;;  %1728 = vst.msk [vmem:[%s3040_s23 + $0x34] sm:$0xf] %vm1394_vm4, %v2091_v17  ;;  %v1541_v34 = vmul.f32 %v2390_v21, %v1509_v57  ;;  %v1510_v3 = vsub.f32 1.0, %v2384_v59 }
 0x135   : > { %2411 = vtanh.f32 %v1139_v55  ;;  %v1142_v6 = vadd.f32 %v3108_v33, %v2950_v48  ;;  %v2394_v0 = vpop.eup %2393  ;;  %v1539_v29 = vmul.f32 %v2392_v62, %v1507_v4  ;;  %v1508_v23 = vsub.f32 1.0, %v2386_v36 }
 0x136   : > { %2413 = vrcp.f32 %v874_v38  ;;  %v754_v63 = vadd.f32 %v3173_v24, %v2941_v39  ;;  %v2396_v25 = vpop.eup %2395  ;;  %v1573_v28 = vadd.f32 %v1541_v34, %v1477_v43  ;;  %v879_v45 = vadd.f32 1.0, %v2394_v0 }
 0x137   : > { %2415 = vtanh.f32 %v1131_v58  ;;  %v1985_v41 = vmul.f32 -1.442695, %v743_v15  ;;  %v2398_v52 = vpop.eup %2397  ;;  %v1481_v42 = vmul.f32 %v2396_v25, %v1449_v31  ;;  %v1571_v7 = vadd.f32 %v1539_v29, %v1475_v40 }
 0x138   : > { %2417 = vpow2.f32 %v1987_v2  ;;  %v746_v33 = vadd.f32 %v2941_v39, %v3179_v9  ;;  %v2400_v12 = vpop.eup %2399  ;;  %v2096_v50 = vpack.c.bf16 %v1573_v28, %v1573_v28  ;;  %v1542_v24 = vmul.f32 %v2398_v52, %v1510_v3 }
 0x139   : > { %2419 = vrcp.f32 %v879_v45  ;;  %v1134_v43 = vadd.f32 %v2950_v48, %v3119_v49  ;;  %v2402_v55 = vpop.eup %2401  ;;  %v2094_v5 = vpack.c.bf16 %v1571_v7, %v1571_v7  ;;  %v877_v8 = vadd.f32 1.0, %v2400_v12 }
 0x13a   : > { %2421 = vtanh.f32 %v1142_v6  ;;  %v1988_v10 = vmul.f32 -1.442695, %v754_v63  ;;  %v2404_v31 = vpop.eup %2403  ;;  %v1479_v40 = vmul.f32 %v2402_v55, %v1447_v47  ;;  %v1448_v32 = vunpack.c.h.bf16 %v2867_v14  ;;  %1733 = vst.msk [vmem:[%s3040_s23 + $0x48] sm:$0xf] %vm1394_vm4, %v2096_v50 }
 0x13b   : > { %v1574_v39 = vadd.f32 %v1542_v24, %v1478_v37  ;;  %2423 = vpow2.f32 %v1985_v41  ;;  %v2406_v9 = vpop.eup %2405  ;;  %1731 = vst.msk [vmem:[%s3040_s23 + $0x40] sm:$0xf] %vm1394_vm4, %v2094_v5  ;;  %v1540_v49 = vmul.f32 %v2404_v31, %v1508_v23  ;;  %v1513_v56 = vsub.f32 1.0, %v2396_v25 }
 0x13c   : > { %2425 = vrcp.f32 %v877_v8  ;;  %v1986_v59 = vmul.f32 -1.442695, %v746_v33  ;;  %v2408_v16 = vpop.eup %2407  ;;  %v880_v57 = vadd.f32 1.0, %v2406_v9  ;;  %v1155_v47 = vadd.f32 %v3144_v11, %v2950_v48 }
 0x13d   : > { %v2097_v54 = vpack.c.bf16 %v1574_v39, %v1574_v39  ;;  %2427 = vtanh.f32 %v1134_v43  ;;  %v2410_v14 = vpop.eup %2409  ;;  %v1482_v36 = vmul.f32 %v2408_v16, %v1450_v46  ;;  %v1572_v60 = vadd.f32 %v1540_v49, %v1476_v20 }
 0x13e   : > { %v1511_v37 = vsub.f32 1.0, %v2402_v55  ;;  %2429 = vpow2.f32 %v1988_v10  ;;  %v878_v35 = vadd.f32 1.0, %v2410_v14  ;;  %v1147_v51 = vadd.f32 %v2950_v48, %v3151_v61  ;;  %v2461_v55 = vld [vmem:[%s3327_s6] ss:$0 sm:$0xff] }
 0x13f   : > { %v2412_v4 = vpop.eup %2411  ;;  %1734 = vst.msk [vmem:[%s3040_s23 + $0x4c] sm:$0xf] %vm1394_vm4, %v2097_v54  ;;  %2431 = vrcp.f32 %v880_v57  ;;  %v1453_v58 = vunpack.c.l.bf16 %v2882_v18  ;;  %v2095_v21 = vpack.c.bf16 %v1572_v60, %v1572_v60  ;;  %v1514_v20 = vsub.f32 1.0, %v2408_v16 }
 0x140   : > { %v2414_v17 = vpop.eup %2413  ;;  %v1545_v38 = vmul.f32 %v2412_v4, %v1513_v56  ;;  %2433 = vpow2.f32 %v1986_v59  ;;  %v1158_v34 = vadd.f32 %v3157_v27, %v2950_v48  ;;  %v1451_v3 = vunpack.c.l.bf16 %v2897_v22 }
 0x141   : > { %v2416_v11 = vpop.eup %2415  ;;  %v1480_v46 = vmul.f32 %v2414_v17, %v1448_v32  ;;  %2435 = vrcp.f32 %v878_v35  ;;  %1732 = vst.msk [vmem:[%s3040_s23 + $0x44] sm:$0xf] %vm1394_vm4, %v2095_v21  ;;  %v1150_v0 = vadd.f32 %v2950_v48, %v3167_v44  ;;  %v1512_v28 = vsub.f32 1.0, %v2414_v17 }
 0x142   : > { %v2418_v2 = vpop.eup %2417  ;;  %v1577_v15 = vadd.f32 %v1545_v38, %v1481_v42  ;;  %v1543_v62 = vmul.f32 %v2416_v11, %v1511_v37  ;;  %2437 = vtanh.f32 %v1155_v47  ;;  %v1454_v41 = vunpack.c.h.bf16 %v2882_v18 }
 0x143   : > { %v2420_v61 = vpop.eup %2419  ;;  %v883_v6 = vadd.f32 1.0, %v2418_v2  ;;  %2439 = vtanh.f32 %v1147_v51  ;;  %v1171_v52 = vadd.f32 %v3191_v19, %v2950_v48  ;;  %v1163_v44 = vadd.f32 %v2950_v48, %v3197_v1 }
 0x144   : > { %v2422_v29 = vpop.eup %2421  ;;  %v1485_v23 = vmul.f32 %v2420_v61, %v1453_v58  ;;  %v2100_v63 = vpack.c.bf16 %v1577_v15, %v1577_v15  ;;  %v1575_v25 = vadd.f32 %v1543_v62, %v1479_v40  ;;  %v1452_v43 = vunpack.c.h.bf16 %v2897_v22 }
 0x145   : > { %v2424_v45 = vpop.eup %2423  ;;  %2441 = vrcp.f32 %v883_v6  ;;  %v1546_v27 = vmul.f32 %v2422_v29, %v1514_v20  ;;  %v1174_v5 = vadd.f32 %v2461_v55, %v3201_v53  ;;  %v1517_v10 = vsub.f32 1.0, %v2420_v61 }
 0x146   : > { %v2426_v42 = vpop.eup %2425  ;;  %1737 = vst.msk [vmem:[%s3040_s23 + $0x58] sm:$0xf] %vm1394_vm4, %v2100_v63  ;;  %v2098_v7 = vpack.c.bf16 %v1575_v25, %v1575_v25  ;;  %v881_v33 = vadd.f32 1.0, %v2424_v45  ;;  %2443 = vtanh.f32 %v1158_v34  ;;  %v1166_v49 = vadd.f32 %v2461_v55, %v3207_v13 }
 0x147   : > { %v2428_v12 = vpop.eup %2427  ;;  %v1483_v50 = vmul.f32 %v2426_v42, %v1451_v3  ;;  %v1578_v24 = vadd.f32 %v1546_v27, %v1482_v36  ;;  %2445 = vtanh.f32 %v1150_v0  ;;  %v1515_v22 = vsub.f32 1.0, %v2426_v42 }
 0x148   : > { %v2430_v18 = vpop.eup %2429  ;;  %1735 = vst.msk [vmem:[%s3040_s23 + $0x50] sm:$0xf] %vm1394_vm4, %v2098_v7  ;;  %2447 = vrcp.f32 %v881_v33  ;;  %v1544_v19 = vmul.f32 %v2428_v12, %v1512_v28  ;;  %v1457_v59 = vunpack.c.l.bf16 %v2912_v26  ;;  %v1455_v37 = vunpack.c.l.bf16 %v2927_v30 }
 0x149   : > { %v2432_v8 = vpop.eup %2431  ;;  %v2101_v48 = vpack.c.bf16 %v1578_v24, %v1578_v24  ;;  %v884_v1 = vadd.f32 1.0, %v2430_v18  ;;  %2449 = vtanh.f32 %v1171_v52  ;;  %v1456_v6 = vunpack.c.h.bf16 %v2927_v30 }
 0x14a   : > { %v2434_v31 = vpop.eup %2433  ;;  %v1486_v40 = vmul.f32 %v2432_v8, %v1454_v41  ;;  %v1576_v32 = vadd.f32 %v1544_v19, %v1480_v46  ;;  %2451 = vtanh.f32 %v1163_v44  ;;  %v1518_v47 = vsub.f32 1.0, %v2432_v8 }
 0x14b   : > { %v2436_v39 = vpop.eup %2435  ;;  %1738 = vst.msk [vmem:[%s3040_s23 + $0x5c] sm:$0xf] %vm1394_vm4, %v2101_v48  ;;  %2453 = vrcp.f32 %v884_v1  ;;  %v882_v9 = vadd.f32 1.0, %v2434_v31  ;;  %v1458_v46 = vunpack.c.h.bf16 %v2912_v26 }
 0x14c   : > { %v2438_v56 = vpop.eup %2437  ;;  %v1484_v53 = vmul.f32 %v2436_v39, %v1452_v43  ;;  %v2099_v16 = vpack.c.bf16 %v1576_v32, %v1576_v32  ;;  %2455 = vtanh.f32 %v1174_v5  ;;  %v1516_v36 = vsub.f32 1.0, %v2436_v39 }
 0x14d   : > { %v2440_v54 = vpop.eup %2439  ;;  %2457 = vrcp.f32 %v882_v9  ;;  %v1549_v57 = vmul.f32 %v2438_v56, %v1517_v10 }
 0x14e   : > { %1736 = vst.msk [vmem:[%s3040_s23 + $0x54] sm:$0xf] %vm1394_vm4, %v2099_v16  ;;  %v1547_v14 = vmul.f32 %v2440_v54, %v1515_v22  ;;  %2459 = vtanh.f32 %v1166_v49 }
 0x14f   : > { %v2442_v60 = vpop.eup %2441  ;;  %v1581_v4 = vadd.f32 %v1549_v57, %v1485_v23 }
 0x150   : > { %v2444_v13 = vpop.eup %2443  ;;  %v1489_v35 = vmul.f32 %v2442_v60, %v1457_v59  ;;  %v1579_v51 = vadd.f32 %v1547_v14, %v1483_v50  ;;  %v1521_v17 = vsub.f32 1.0, %v2442_v60 }
 0x151   : > { %v2446_v58 = vpop.eup %2445  ;;  %v2104_v21 = vpack.c.bf16 %v1581_v4, %v1581_v4  ;;  %v1550_v38 = vmul.f32 %v2444_v13, %v1518_v47 }
 0x152   : > { %v2448_v11 = vpop.eup %2447  ;;  %v2102_v20 = vpack.c.bf16 %v1579_v51, %v1579_v51  ;;  %v1548_v2 = vmul.f32 %v2446_v58, %v1516_v36 }
 0x153   : > { %v2450_v15 = vpop.eup %2449  ;;  %v1487_v62 = vmul.f32 %v2448_v11, %v1455_v37  ;;  %1741 = vst.msk [vmem:[%s3040_s23 + $0x68] sm:$0xf] %vm1394_vm4, %v2104_v21  ;;  %v1582_v34 = vadd.f32 %v1550_v38, %v1486_v40  ;;  %v1519_v61 = vsub.f32 1.0, %v2448_v11 }
 0x154   : > { %v2452_v3 = vpop.eup %2451  ;;  %1739 = vst.msk [vmem:[%s3040_s23 + $0x60] sm:$0xf] %vm1394_vm4, %v2102_v20  ;;  %v1580_v0 = vadd.f32 %v1548_v2, %v1484_v53  ;;  %v1553_v29 = vmul.f32 %v2450_v15, %v1521_v17 }
 0x155   : > { %v2454_v23 = vpop.eup %2453  ;;  %v2105_v63 = vpack.c.bf16 %v1582_v34, %v1582_v34  ;;  %v1551_v26 = vmul.f32 %v2452_v3, %v1519_v61 }
 0x156   : > { %v2456_v25 = vpop.eup %2455  ;;  %v1490_v28 = vmul.f32 %v2454_v23, %v1458_v46  ;;  %v2103_v45 = vpack.c.bf16 %v1580_v0, %v1580_v0  ;;  %v1585_v41 = vadd.f32 %v1553_v29, %v1489_v35  ;;  %v1522_v27 = vsub.f32 1.0, %v2454_v23 }
 0x157   : > { %v2458_v52 = vpop.eup %2457  ;;  %1742 = vst.msk [vmem:[%s3040_s23 + $0x6c] sm:$0xf] %vm1394_vm4, %v2105_v63  ;;  %v1583_v30 = vadd.f32 %v1551_v26, %v1487_v62 }
 0x158   : > { %v1488_v42 = vmul.f32 %v2458_v52, %v1456_v6  ;;  %1740 = vst.msk [vmem:[%s3040_s23 + $0x64] sm:$0xf] %vm1394_vm4, %v2103_v45  ;;  %v2108_v7 = vpack.c.bf16 %v1585_v41, %v1585_v41  ;;  %v1554_v33 = vmul.f32 %v2456_v25, %v1522_v27  ;;  %v1520_v44 = vsub.f32 1.0, %v2458_v52  ;;  %v2460_v12 = vpop.eup %2459 }
 0x159   : > { %v2106_v50 = vpack.c.bf16 %v1583_v30, %v1583_v30 }
 0x15a   : > { %1745 = vst.msk [vmem:[%s3040_s23 + $0x78] sm:$0xf] %vm1394_vm4, %v2108_v7  ;;  %v1586_v24 = vadd.f32 %v1554_v33, %v1490_v28  ;;  %v1552_v18 = vmul.f32 %v2460_v12, %v1520_v44 }
 0x15b   : > { %1743 = vst.msk [vmem:[%s3040_s23 + $0x70] sm:$0xf] %vm1394_vm4, %v2106_v50 }
 0x15c   : > { %v2109_v43 = vpack.c.bf16 %v1586_v24, %v1586_v24  ;;  %v1584_v19 = vadd.f32 %v1552_v18, %v1488_v42 }
 0x15e   : > { %1746 = vst.msk [vmem:[%s3040_s23 + $0x7c] sm:$0xf] %vm1394_vm4, %v2109_v43  ;;  %v2107_v55 = vpack.c.bf16 %v1584_v19, %v1584_v19 }
 0x160   : > { %1744 = vst.msk [vmem:[%s3040_s23 + $0x74] sm:$0xf] %vm1394_vm4, %v2107_v55 }
 0x161 PF: > { %s19_s29 = sadd.s32 1, %s2484_s29   ;;  %s3336_s27 = smov %s2480_s28 }
 0x162   : > { %p16_p5 = scmp.ge.s32.totalorder %s19_s29, 4   ;;  %s3337_s28 = smov %s3339_s30 }
 0x164   :  { %18 = sbr.rel (!%p16_p5) target bundleno = 2 (0x2), region = 99 }

</bundles_post_ra>
